<compile_context>
chip_gen: v6e
topology: v6e:2x2x1
jax: 0.10.0
libtpu: 0.0.40
codegen_flags: <defaults>
</compile_context>

<pallas_src>
from functools import partial

import jax
import jax.numpy as jnp
from jax.experimental import pallas as pl
from jax.experimental.pallas import tpu as pltpu


_K_CHUNK = 2048  # vocab (contraction) lanes handled per one-hot chunk


def _embed_kernel(idx_ref, table_ref, out_ref, *, precision):
    """One grid step: gather TILE_R * P embedding rows via one-hot MXU matmuls.

    idx_ref:   (TILE_R, P) int32 -- packed indices; row r, col j holds the
               original flat index P*r + j (clamped to [0, V-1]).
    table_ref: (V, Dp) resident embedding table (Dp = lane-padded vocab_dim).
    out_ref:   (TILE_R, P*Dp) lane-dense packed output block.
    """
    tile_r, p = idx_ref.shape
    v, dp = table_ref.shape
    idx = idx_ref[...]

    accs = [None] * p
    n_chunks = (v + _K_CHUNK - 1) // _K_CHUNK
    for c in range(n_chunks):                       # static; 1 chunk for small V
        lo = c * _K_CHUNK
        w = min(_K_CHUNK, v - lo)
        # (1, w) iota built once per chunk, broadcast inside the compare.
        lane = jax.lax.broadcasted_iota(jnp.int32, (1, w), 1) + lo
        tbl_c = table_ref[lo:lo + w, :]              # (w, Dp) static slice
        for j in range(p):                           # static; p = 128 // D
            onehot = (lane == idx[:, j:j + 1]).astype(tbl_c.dtype)  # (TILE_R, w)
            part = jnp.dot(onehot, tbl_c,
                           preferred_element_type=jnp.float32,
                           precision=precision)
            accs[j] = part if accs[j] is None else accs[j] + part

    packed = accs[0] if p == 1 else jnp.concatenate(accs, axis=-1)
    out_ref[...] = packed.astype(out_ref.dtype)


def _round_up(a, b):
    return ((a + b - 1) // b) * b


def _sublane(dtype):
    # 8 rows for f32, 16 for bf16, 32 for int8/fp8.
    return max(8, 32 // jnp.dtype(dtype).itemsize)


def embedding_lookup(weight, x, *, max_tile_rows=256, precision=None):
    """forward(x) = emb(x); equivalent to weight[x] (indices clamped to range).

    Pass precision=jax.lax.Precision.HIGHEST if a bit-exact f32 lookup (vs the
    MXU's default multi-pass f32 matmul) is required.
    """
    V, D = weight.shape
    flat_idx = jnp.clip(x.reshape(-1).astype(jnp.int32), 0, V - 1)
    N = flat_idx.shape[0]

    # Lane packing: P embedding rows per 128-lane output row when D | 128;
    # otherwise pad the embedding dim to a multiple of 128 (lane-dense output).
    if D < 128 and 128 % D == 0:
        P, Dp = 128 // D, D
    else:
        P, Dp = 1, _round_up(D, 128)
    table = weight if Dp == D else jnp.pad(weight, ((0, 0), (0, Dp - D)))
    # TODO(synk): for huge vocabularies (V*Dp*itemsize approaching per-core
    # VMEM, ~48 MiB on v7x) switch to a DMA-gather path instead of a resident
    # table + one-hot matmul.

    # Packed-row tiling: sublane-aligned for the table dtype and sized to give
    # >= 2 grid steps when possible (keeps both v7x TensorCores busy).
    R = pl.cdiv(N, P)
    sub = _sublane(weight.dtype)
    tile_r = max(sub, min(max_tile_rows, _round_up(pl.cdiv(R, 2), sub)))
    r_pad = _round_up(R, tile_r)
    n_pad = r_pad * P

    idx = jnp.pad(flat_idx, (0, n_pad - N)).reshape(r_pad, P)

    # Explicit VMEM budget: single-buffered table + double-buffered idx/out
    # tiles + one-hot / accumulator intermediates, plus headroom.
    itemsize = jnp.dtype(weight.dtype).itemsize
    out_w = P * Dp
    k_chunk = min(V, _K_CHUNK)
    need = (V * Dp * itemsize                        # resident table (Buffered(1))
            + 2 * tile_r * 128 * 4                   # idx tiles (lane-padded i32)
            + 2 * tile_r * out_w * itemsize          # output tiles
            + 2 * tile_r * k_chunk * 4               # iota/compare + one-hot
            + P * tile_r * Dp * 4)                   # f32 accumulators
    vmem_limit = int(max(need + (8 << 20), 32 << 20))

    kernel = partial(_embed_kernel, precision=precision)

    def build(table_pipeline_mode):
        table_kwargs = ({} if table_pipeline_mode is None
                        else {"pipeline_mode": table_pipeline_mode})
        return pl.pallas_call(
            kernel,
            out_shape=jax.ShapeDtypeStruct((r_pad, out_w), weight.dtype),
            grid_spec=pltpu.PrefetchScalarGridSpec(
                num_scalar_prefetch=0,
                grid=(r_pad // tile_r,),
                in_specs=[
                    pl.BlockSpec((tile_r, P), lambda i: (i, 0)),     # index tiles
                    pl.BlockSpec((V, Dp), lambda i: (0, 0),          # resident table
                                 **table_kwargs),
                ],
                out_specs=pl.BlockSpec((tile_r, out_w), lambda i: (i, 0)),
            ),
            compiler_params=pltpu.CompilerParams(
                dimension_semantics=("parallel",),
                vmem_limit_bytes=vmem_limit,
            ),
        )

    try:
        # Single-buffer the constant-index table (halves its VMEM footprint).
        out = build(pl.Buffered(1))(idx, table)
    except Exception:
        # Fallback: default (double-buffered) pipeline for the table.
        out = build(None)(idx, table)

    out = out.reshape(r_pad * P, Dp)[:N, :D]
    return out.reshape(x.shape + (D,))


if __name__ == "__main__":
    key = jax.random.PRNGKey(0)
    wkey, xkey = jax.random.split(key)

    # Small, module-consistent shapes: vocab_size=100, vocab_dim=32, batch=2, seq=8.
    V, D = 100, 32
    B, L = 2, 8

    # Deterministic parameter init (nn.Embedding weight ~ N(0, 1) by default).
    weight = jax.random.normal(wkey, (V, D), dtype=jnp.float32)
    x = jax.random.randint(xkey, (B, L), 0, V, dtype=jnp.int32)

    y = embedding_lookup(weight, x)
    jax.block_until_ready(y)

    ref = weight[x]  # pure-JAX reference of nn.Embedding forward
    assert y.shape == (B, L, D), y.shape
    assert jnp.allclose(y, ref), "mismatch vs reference embedding lookup"

    # TODO(synk): load_pretrain_embedding is checkpoint-loading glue, not kernel work.
    print("KERNEL_OK")
</pallas_src>

<mosaic_0001>
module attributes {stable_mosaic.version = 11 : i64} {
  func.func @_embed_kernel(%arg0: i32, %arg1: memref<8x4xi32, #tpu.memory_space<vmem>>, %arg2: memref<100x32xf32, #tpu.memory_space<vmem>>, %arg3: memref<8x128xf32, #tpu.memory_space<vmem>>) attributes {dimension_semantics = [#tpu.dimension_semantics<parallel>], iteration_bounds = array<i64: 1>, scalar_prefetch = 0 : i64, scratch_operands = 0 : i64, tpu.core_type = #tpu.core_type<tc>, window_params = [{transform_indices = @transform_0, window_bounds = array<i64: 8, 4>}, {pipeline_mode = #tpu.pipeline_mode<synchronous>, transform_indices = @transform_1, window_bounds = array<i64: 100, 32>}, {transform_indices = @transform_2, window_bounds = array<i64: 8, 128>}]} {
    %c0 = arith.constant 0 : index
    %c0_0 = arith.constant 0 : index
    %0 = vector.load %arg1[%c0, %c0_0] : memref<8x4xi32, #tpu.memory_space<vmem>>, vector<8x4xi32>
    %1 = tpu.iota {dimensions = array<i32: 1>} : vector<1x100xi32>
    %c0_i32 = arith.constant 0 : i32
    %2 = vector.broadcast %c0_i32 : i32 to vector<1x100xi32>
    %3 = arith.addi %1, %2 : vector<1x100xi32>
    %c0_1 = arith.constant 0 : index
    %c0_2 = arith.constant 0 : index
    %4 = vector.load %arg2[%c0_1, %c0_2] : memref<100x32xf32, #tpu.memory_space<vmem>>, vector<100x32xf32>
    %5 = vector.extract_strided_slice %0 {offsets = [0, 0], sizes = [8, 1], strides = [1, 1]} : vector<8x4xi32> to vector<8x1xi32>
    %6 = vector.broadcast %3 : vector<1x100xi32> to vector<8x100xi32>
    %7 = vector.broadcast %5 : vector<8x1xi32> to vector<8x100xi32>
    %8 = arith.cmpi eq, %6, %7 : vector<8x100xi32>
    %9 = arith.extui %8 : vector<8x100xi1> to vector<8x100xi32>
    %10 = arith.sitofp %9 : vector<8x100xi32> to vector<8x100xf32>
    %cst = arith.constant dense<0.000000e+00> : vector<8x32xf32>
    %11 = tpu.matmul %10, %4, %cst {dimension_numbers = #tpu.dot_dimension_numbers<[1], [0], [0], [1], [0, 0, 1, 1], [], []>} : vector<8x100xf32>, vector<100x32xf32>, vector<8x32xf32> -> vector<8x32xf32>
    %12 = vector.extract_strided_slice %0 {offsets = [0, 1], sizes = [8, 1], strides = [1, 1]} : vector<8x4xi32> to vector<8x1xi32>
    %13 = vector.broadcast %3 : vector<1x100xi32> to vector<8x100xi32>
    %14 = vector.broadcast %12 : vector<8x1xi32> to vector<8x100xi32>
    %15 = arith.cmpi eq, %13, %14 : vector<8x100xi32>
    %16 = arith.extui %15 : vector<8x100xi1> to vector<8x100xi32>
    %17 = arith.sitofp %16 : vector<8x100xi32> to vector<8x100xf32>
    %cst_3 = arith.constant dense<0.000000e+00> : vector<8x32xf32>
    %18 = tpu.matmul %17, %4, %cst_3 {dimension_numbers = #tpu.dot_dimension_numbers<[1], [0], [0], [1], [0, 0, 1, 1], [], []>} : vector<8x100xf32>, vector<100x32xf32>, vector<8x32xf32> -> vector<8x32xf32>
    %19 = vector.extract_strided_slice %0 {offsets = [0, 2], sizes = [8, 1], strides = [1, 1]} : vector<8x4xi32> to vector<8x1xi32>
    %20 = vector.broadcast %3 : vector<1x100xi32> to vector<8x100xi32>
    %21 = vector.broadcast %19 : vector<8x1xi32> to vector<8x100xi32>
    %22 = arith.cmpi eq, %20, %21 : vector<8x100xi32>
    %23 = arith.extui %22 : vector<8x100xi1> to vector<8x100xi32>
    %24 = arith.sitofp %23 : vector<8x100xi32> to vector<8x100xf32>
    %cst_4 = arith.constant dense<0.000000e+00> : vector<8x32xf32>
    %25 = tpu.matmul %24, %4, %cst_4 {dimension_numbers = #tpu.dot_dimension_numbers<[1], [0], [0], [1], [0, 0, 1, 1], [], []>} : vector<8x100xf32>, vector<100x32xf32>, vector<8x32xf32> -> vector<8x32xf32>
    %26 = vector.extract_strided_slice %0 {offsets = [0, 3], sizes = [8, 1], strides = [1, 1]} : vector<8x4xi32> to vector<8x1xi32>
    %27 = vector.broadcast %3 : vector<1x100xi32> to vector<8x100xi32>
    %28 = vector.broadcast %26 : vector<8x1xi32> to vector<8x100xi32>
    %29 = arith.cmpi eq, %27, %28 : vector<8x100xi32>
    %30 = arith.extui %29 : vector<8x100xi1> to vector<8x100xi32>
    %31 = arith.sitofp %30 : vector<8x100xi32> to vector<8x100xf32>
    %cst_5 = arith.constant dense<0.000000e+00> : vector<8x32xf32>
    %32 = tpu.matmul %31, %4, %cst_5 {dimension_numbers = #tpu.dot_dimension_numbers<[1], [0], [0], [1], [0, 0, 1, 1], [], []>} : vector<8x100xf32>, vector<100x32xf32>, vector<8x32xf32> -> vector<8x32xf32>
    %33 = tpu.concatenate %11, %18, %25, %32 in 1 : vector<8x32xf32>, vector<8x32xf32>, vector<8x32xf32>, vector<8x32xf32> -> vector<8x128xf32>
    %c0_6 = arith.constant 0 : index
    %c0_7 = arith.constant 0 : index
    %34 = vector.load %arg3[%c0_6, %c0_7] : memref<8x128xf32, #tpu.memory_space<vmem>>, vector<8x128xf32>
    tpu.vector_store %arg3[%c0_6, %c0_7], %33 {strides = array<i32>} : memref<8x128xf32, #tpu.memory_space<vmem>>, vector<8x128xf32>,
    return
  }
  func.func @transform_0(%arg0: i32) -> (i32, i32) {
    %c0_i32 = arith.constant 0 : i32
    %c0_i32_0 = arith.constant 0 : i32
    return %arg0, %c0_i32 : i32, i32
  }
  func.func @transform_1(%arg0: i32) -> (i32, i32) {
    %c0_i32 = arith.constant 0 : i32
    %c0_i32_0 = arith.constant 0 : i32
    %c0_i32_1 = arith.constant 0 : i32
    return %c0_i32, %c0_i32_0 : i32, i32
  }
  func.func @transform_2(%arg0: i32) -> (i32, i32) {
    %c0_i32 = arith.constant 0 : i32
    %c0_i32_0 = arith.constant 0 : i32
    return %arg0, %c0_i32 : i32, i32
  }
}

module attributes {stable_mosaic.version = 11 : i64} {
  func.func @_embed_kernel(%arg0: i32, %arg1: memref<8x4xi32, #tpu.memory_space<vmem>>, %arg2: memref<100x32xf32, #tpu.memory_space<vmem>>, %arg3: memref<8x128xf32, #tpu.memory_space<vmem>>) attributes {dimension_semantics = [#tpu.dimension_semantics<parallel>], iteration_bounds = array<i64: 1>, scalar_prefetch = 0 : i64, scratch_operands = 0 : i64, tpu.core_type = #tpu.core_type<tc>, window_params = [{transform_indices = @transform_0, window_bounds = array<i64: 8, 4>}, {pipeline_mode = #tpu.pipeline_mode<synchronous>, transform_indices = @transform_1, window_bounds = array<i64: 100, 32>}, {transform_indices = @transform_2, window_bounds = array<i64: 8, 128>}]} {
    %c0 = arith.constant 0 : index
    %c0_0 = arith.constant 0 : index
    %0 = vector.load %arg1[%c0, %c0_0] : memref<8x4xi32, #tpu.memory_space<vmem>>, vector<8x4xi32>
    %1 = tpu.iota {dimensions = array<i32: 1>} : vector<1x100xi32>
    %c0_i32 = arith.constant 0 : i32
    %2 = vector.broadcast %c0_i32 : i32 to vector<1x100xi32>
    %3 = arith.addi %1, %2 : vector<1x100xi32>
    %c0_1 = arith.constant 0 : index
    %c0_2 = arith.constant 0 : index
    %4 = vector.load %arg2[%c0_1, %c0_2] : memref<100x32xf32, #tpu.memory_space<vmem>>, vector<100x32xf32>
    %5 = vector.extract_strided_slice %0 {offsets = [0, 0], sizes = [8, 1], strides = [1, 1]} : vector<8x4xi32> to vector<8x1xi32>
    %6 = vector.broadcast %3 : vector<1x100xi32> to vector<8x100xi32>
    %7 = vector.broadcast %5 : vector<8x1xi32> to vector<8x100xi32>
    %8 = arith.cmpi eq, %6, %7 : vector<8x100xi32>
    %9 = arith.extui %8 : vector<8x100xi1> to vector<8x100xi32>
    %10 = arith.sitofp %9 : vector<8x100xi32> to vector<8x100xf32>
    %cst = arith.constant dense<0.000000e+00> : vector<8x32xf32>
    %11 = tpu.matmul %10, %4, %cst {dimension_numbers = #tpu.dot_dimension_numbers<[1], [0], [0], [1], [0, 0, 1, 1], [], []>} : vector<8x100xf32>, vector<100x32xf32>, vector<8x32xf32> -> vector<8x32xf32>
    %12 = vector.extract_strided_slice %0 {offsets = [0, 1], sizes = [8, 1], strides = [1, 1]} : vector<8x4xi32> to vector<8x1xi32>
    %13 = vector.broadcast %3 : vector<1x100xi32> to vector<8x100xi32>
    %14 = vector.broadcast %12 : vector<8x1xi32> to vector<8x100xi32>
    %15 = arith.cmpi eq, %13, %14 : vector<8x100xi32>
    %16 = arith.extui %15 : vector<8x100xi1> to vector<8x100xi32>
    %17 = arith.sitofp %16 : vector<8x100xi32> to vector<8x100xf32>
    %cst_3 = arith.constant dense<0.000000e+00> : vector<8x32xf32>
    %18 = tpu.matmul %17, %4, %cst_3 {dimension_numbers = #tpu.dot_dimension_numbers<[1], [0], [0], [1], [0, 0, 1, 1], [], []>} : vector<8x100xf32>, vector<100x32xf32>, vector<8x32xf32> -> vector<8x32xf32>
    %19 = vector.extract_strided_slice %0 {offsets = [0, 2], sizes = [8, 1], strides = [1, 1]} : vector<8x4xi32> to vector<8x1xi32>
    %20 = vector.broadcast %3 : vector<1x100xi32> to vector<8x100xi32>
    %21 = vector.broadcast %19 : vector<8x1xi32> to vector<8x100xi32>
    %22 = arith.cmpi eq, %20, %21 : vector<8x100xi32>
    %23 = arith.extui %22 : vector<8x100xi1> to vector<8x100xi32>
    %24 = arith.sitofp %23 : vector<8x100xi32> to vector<8x100xf32>
    %cst_4 = arith.constant dense<0.000000e+00> : vector<8x32xf32>
    %25 = tpu.matmul %24, %4, %cst_4 {dimension_numbers = #tpu.dot_dimension_numbers<[1], [0], [0], [1], [0, 0, 1, 1], [], []>} : vector<8x100xf32>, vector<100x32xf32>, vector<8x32xf32> -> vector<8x32xf32>
    %26 = vector.extract_strided_slice %0 {offsets = [0, 3], sizes = [8, 1], strides = [1, 1]} : vector<8x4xi32> to vector<8x1xi32>
    %27 = vector.broadcast %3 : vector<1x100xi32> to vector<8x100xi32>
    %28 = vector.broadcast %26 : vector<8x1xi32> to vector<8x100xi32>
    %29 = arith.cmpi eq, %27, %28 : vector<8x100xi32>
    %30 = arith.extui %29 : vector<8x100xi1> to vector<8x100xi32>
    %31 = arith.sitofp %30 : vector<8x100xi32> to vector<8x100xf32>
    %cst_5 = arith.constant dense<0.000000e+00> : vector<8x32xf32>
    %32 = tpu.matmul %31, %4, %cst_5 {dimension_numbers = #tpu.dot_dimension_numbers<[1], [0], [0], [1], [0, 0, 1, 1], [], []>} : vector<8x100xf32>, vector<100x32xf32>, vector<8x32xf32> -> vector<8x32xf32>
    %33 = tpu.concatenate %11, %18, %25, %32 in 1 : vector<8x32xf32>, vector<8x32xf32>, vector<8x32xf32>, vector<8x32xf32> -> vector<8x128xf32>
    %c0_6 = arith.constant 0 : index
    %c0_7 = arith.constant 0 : index
    %34 = vector.load %arg3[%c0_6, %c0_7] : memref<8x128xf32, #tpu.memory_space<vmem>>, vector<8x128xf32>
    tpu.vector_store %arg3[%c0_6, %c0_7], %33 {strides = array<i32>} : memref<8x128xf32, #tpu.memory_space<vmem>>, vector<8x128xf32>,
    return
  }
  func.func @transform_0(%arg0: i32) -> (i32, i32) {
    %c0_i32 = arith.constant 0 : i32
    %c0_i32_0 = arith.constant 0 : i32
    return %arg0, %c0_i32 : i32, i32
  }
  func.func @transform_1(%arg0: i32) -> (i32, i32) {
    %c0_i32 = arith.constant 0 : i32
    %c0_i32_0 = arith.constant 0 : i32
    %c0_i32_1 = arith.constant 0 : i32
    return %c0_i32, %c0_i32_0 : i32, i32
  }
  func.func @transform_2(%arg0: i32) -> (i32, i32) {
    %c0_i32 = arith.constant 0 : i32
    %c0_i32_0 = arith.constant 0 : i32
    return %arg0, %c0_i32 : i32, i32
  }
}

</mosaic_0001>

<bundles_post_ra>
// kernel: tpu_custom_call.1
= control target key start
LH: loop header
LB: loop body
LE: loop exit
PB: predicated region body
PF: predicated region fallthrough
CT: control target
= control target key end

     0   :  { %v603_v1 = vmov 0   ;;  %v604_v2 = vmov 2   ;;  %vm38_vm0 = vcmask 1043456   ;;  %v605_v4 = vmov 0.0   ;;  %s831_s0 = inlined_call_operand.vmem [shape: s32[8,4], index: 0, kind: input, shape index: {}]   ;;  %s832_s1 = inlined_call_operand.vmem [shape: f32[100,32], index: 1, kind: input, shape index: {}]   ;;  %s833_s2 = inlined_call_operand.hbm [shape: f32[8,128], index: 2, kind: output, shape index: {}]  }
   0x1   :  { %v12_v0 = vld [vmem:[%s831_s0] sm:$0xff]  ;;  %576 = vset.pattern.permute.xlu0 %v603_v1  ;;  %578 = vset.pattern.permute.xlu1 %v604_v2  ;;  %v646_v5 = vld [vmem:[%s832_s1 + $0x58] sm:$0xff] }
   0x2   :  { %v634_v3 = vld [vmem:[%s832_s1 + $0x60] sm:$0xf]  ;;  %29 = vperm.xlu0 %576, %v12_v0   ;;  %192 = vperm.xlu1 %578, %v12_v0  }
   0x3   :  { %450 = vmatprep.subr.mxu0 %v605_v4  ;;  %479 = vmatprep.subr.mxu1 %v605_v4 }
   0x4   :  { %451 = vmatpush3.msk.msra.mxu0 %vm38_vm0, %v634_v3  ;;  %480 = vmatpush3.msk.msra.mxu1 %vm38_vm0, %v634_v3 }
   0x5   :  { %452 = vmatprep.subr.mxu0 %v605_v4  ;;  %481 = vmatprep.subr.mxu1 %v605_v4 }
   0x6   :  { %7 = vsyncpa [#allocation3], 0  ;;  %v606_v6 = vmov 1   ;;  %v607_v7 = vmov 3   ;;  %v653_v8 = vld [vmem:[%s832_s1 + $0x50] sm:$0xff]  ;;  %453 = vmatpush3.msra.mxu0 %v646_v5  ;;  %482 = vmatpush3.msra.mxu1 %v646_v5  ;;  %v661_v9 = vld [vmem:[%s832_s1 + $0x48] sm:$0xff]  ;;  %v13_v19 = vlaneseq }
   0x7   :  { %577 = vset.pattern.permute.xlu0 %v606_v6  ;;  %579 = vset.pattern.permute.xlu1 %v607_v7  ;;  %v670_v10 = vld [vmem:[%s832_s1 + $0x40] sm:$0xff]  ;;  %v679_v11 = vld [vmem:[%s832_s1 + $0x38] sm:$0xff]  ;;  %v688_v12 = vld [vmem:[%s832_s1 + $0x30] sm:$0xff]  ;;  %vm608_vm1 = vmmov 0   ;;  %vm34_vm2 = vcmask 818176   ;;  %s610_s8 = smov 64  }
   0x8   :  { %113 = vperm.xlu0 %577, %v12_v0   ;;  %271 = vperm.xlu1 %579, %v12_v0   ;;  %v697_v13 = vld [vmem:[%s832_s1 + $0x28] sm:$0xff]  ;;  %v706_v14 = vld [vmem:[%s832_s1 + $0x20] sm:$0xff]  ;;  %v715_v15 = vld [vmem:[%s832_s1 + $0x18] sm:$0xff]  ;;  %v758_v20 = vand.u32 127, %v13_v19  ;;  %s611_s9 = smov 96   ;;  %vm361_vm7 = vcmask 261120  }
   0x9   :  { %454 = vmatprep.subr.mxu0 %v605_v4  ;;  %483 = vmatprep.subr.mxu1 %v605_v4  ;;  %v724_v16 = vld [vmem:[%s832_s1 + $0x10] sm:$0xff]  ;;  %v733_v17 = vld [vmem:[%s832_s1 + $0x8] sm:$0xff]  ;;  %v743_v18 = vld [vmem:[%s832_s1] sm:$0xff]  ;;  %s609_s1 = smov 32   ;;  %vm363_vm8 = vcmask 523264   ;;  %s612_s10 = smov [#allocation2]  }
   0xa   :  { %455 = vmatpush3.msra.mxu0 %v653_v8  ;;  %484 = vmatpush3.msra.mxu1 %v653_v8  ;;  %s374_s11 = sshll.u32 %s612_s10, 4  ;;  %vm365_vm9 = vcmask 785408   ;;  %s375_s11 = int_to_ptr.vmem [resolvable:$true] %s374_s11 }
   0xb   :  { %456 = vmatprep.subr.mxu0 %v605_v4  ;;  %485 = vmatprep.subr.mxu1 %v605_v4  ;;  %s581_s12 = scalar_lea.vmem %s375_s11, 128  ;;  %p586_p1 = scmp.lt.s32.totalorder %s375_s11, %s375_s11 }
   0xc   :  { %457 = vmatpush3.msra.mxu0 %v661_v9  ;;  %486 = vmatpush3.msra.mxu1 %v661_v9  ;;  %p582_p0 = scmp.ne.s32.totalorder %s375_s11, %s581_s12  ;;  %p587_p2 = scmp.lt.s32.totalorder %s581_s12, %s581_s12 }
   0xd   :  { %458 = vmatprep.subr.mxu0 %v605_v4  ;;  %487 = vmatprep.subr.mxu1 %v605_v4 }
   0xe   :  { %459 = vmatpush3.msra.mxu0 %v670_v10  ;;  %488 = vmatpush3.msra.mxu1 %v670_v10  ;;  %p588_p3 = por %p587_p2, %p586_p1 }
   0xf   :  { %460 = vmatprep.subr.mxu0 %v605_v4  ;;  %489 = vmatprep.subr.mxu1 %v605_v4 }
  0x10   :  { %461 = vmatpush3.msra.mxu0 %v679_v11  ;;  %490 = vmatpush3.msra.mxu1 %v679_v11  ;;  %p589_p4 = pnand %p588_p3, %p582_p0 }
  0x11   :  { %462 = vmatprep.subr.mxu0 %v605_v4  ;;  %491 = vmatprep.subr.mxu1 %v605_v4 }
  0x12   :  { %463 = vmatpush3.msra.mxu0 %v688_v12  ;;  %492 = vmatpush3.msra.mxu1 %v688_v12 }
  0x13   :  { %464 = vmatprep.subr.mxu0 %v605_v4  ;;  %493 = vmatprep.subr.mxu1 %v605_v4 }
  0x14   :  { %465 = vmatpush3.msra.mxu0 %v697_v13  ;;  %494 = vmatpush3.msra.mxu1 %v697_v13 }
  0x15   :  { %466 = vmatprep.subr.mxu0 %v605_v4  ;;  %495 = vmatprep.subr.mxu1 %v605_v4 }
  0x16   :  { %467 = vmatpush3.msra.mxu0 %v706_v14  ;;  %496 = vmatpush3.msra.mxu1 %v706_v14 }
  0x17   :  { %468 = vmatprep.subr.mxu0 %v605_v4  ;;  %497 = vmatprep.subr.mxu1 %v605_v4 }
  0x18   :  { %469 = vmatpush3.msra.mxu0 %v715_v15  ;;  %498 = vmatpush3.msra.mxu1 %v715_v15 }
  0x19   :  { %470 = vmatprep.subr.mxu0 %v605_v4  ;;  %499 = vmatprep.subr.mxu1 %v605_v4 }
  0x1a   :  { %471 = vmatpush3.msra.mxu0 %v724_v16  ;;  %476 = vmatprep.mubr.msk.f32.mxu0 %vm608_vm1, %v605_v4 }
  0x1b   :  { %472 = vmatprep.subr.mxu0 %v605_v4  ;;  %500 = vmatpush3.msra.mxu1 %v724_v16 }
  0x1c   :  { %473 = vmatpush3.msra.mxu0 %v733_v17  ;;  %501 = vmatprep.subr.mxu1 %v605_v4 }
  0x1d   :  { %474 = vmatprep.subr.mxu0 %v605_v4  ;;  %502 = vmatpush3.msra.mxu1 %v733_v17 }
  0x1e   :  { %475 = vmatpush3.msra.mxu0 %v743_v18  ;;  %503 = vmatprep.subr.mxu1 %v605_v4 }
  0x1f   :  { %508 = vmatprep.subr.mxu0 %v605_v4  ;;  %504 = vmatpush3.msra.mxu1 %v743_v18 }
  0x20   :  { %505 = vmatprep.mubr.msk.f32.mxu1 %vm608_vm1, %v605_v4  ;;  %537 = vmatprep.subr.mxu1 %v605_v4 }
  0x21   :  { %580 = vset.pattern.permute.xlu0 %v607_v7 }
  0x7d   :  { %v30_v21 = vpop.permute.xlu0 %29  ;;  %v193_v25 = vpop.permute.xlu1 %192 }
  0x7e   :  { %vm31_vm3 = vcmp.eq.s32.totalorder %v758_v20, %v30_v21  ;;  %vm194_vm5 = vcmp.eq.s32.totalorder %v758_v20, %v193_v25 }
  0x7f   :  { %v382_v22 = vsel %vm31_vm3, 1.0, %v605_v4  ;;  %v388_v27 = vsel %vm194_vm5, 1.0, %v605_v4 }
  0x80   :  { %477 = vmatmul.mubr.msk.f32.vlgmr.msra.gmra.mxu0 %vm34_vm2, %v382_v22 }
  0x81   :  { %509 = vmatpush3.msk.msra.mxu0 %vm38_vm0, %v634_v3  ;;  %534 = vmatprep.mubr.msk.f32.mxu0 %vm608_vm1, %v605_v4 }
  0x82   :  { %510 = vmatprep.subr.mxu0 %v605_v4 }
  0x83   :  { %v114_v23 = vpop.permute.xlu0 %113  ;;  %511 = vmatpush3.msra.mxu0 %v646_v5  ;;  %v272_v26 = vpop.permute.xlu1 %271 }
  0x84   :  { %vm115_vm4 = vcmp.eq.s32.totalorder %v758_v20, %v114_v23  ;;  %512 = vmatprep.subr.mxu0 %v605_v4  ;;  %vm273_vm6 = vcmp.eq.s32.totalorder %v758_v20, %v272_v26 }
  0x85   :  { %v385_v24 = vsel %vm115_vm4, 1.0, %v605_v4  ;;  %513 = vmatpush3.msra.mxu0 %v653_v8  ;;  %v391_v28 = vsel %vm273_vm6, 1.0, %v605_v4 }
  0x86   :  { %506 = vmatmul.mubr.msk.f32.vlgmr.msra.gmra.mxu1 %vm34_vm2, %v385_v24  ;;  %514 = vmatprep.subr.mxu0 %v605_v4 }
  0x87   :  { %538 = vmatpush3.msk.msra.mxu1 %vm38_vm0, %v634_v3  ;;  %515 = vmatpush3.msra.mxu0 %v661_v9 }
  0x88   :  { %539 = vmatprep.subr.mxu1 %v605_v4  ;;  %516 = vmatprep.subr.mxu0 %v605_v4 }
  0x89   :  { %540 = vmatpush3.msra.mxu1 %v646_v5  ;;  %517 = vmatpush3.msra.mxu0 %v670_v10 }
  0x8a   :  { %541 = vmatprep.subr.mxu1 %v605_v4  ;;  %518 = vmatprep.subr.mxu0 %v605_v4 }
  0x8b   :  { %542 = vmatpush3.msra.mxu1 %v653_v8  ;;  %519 = vmatpush3.msra.mxu0 %v679_v11 }
  0x8c   :  { %543 = vmatprep.subr.mxu1 %v605_v4  ;;  %520 = vmatprep.subr.mxu0 %v605_v4 }
  0x8d   :  { %544 = vmatpush3.msra.mxu1 %v661_v9  ;;  %521 = vmatpush3.msra.mxu0 %v688_v12 }
  0x8e   :  { %545 = vmatprep.subr.mxu1 %v605_v4  ;;  %522 = vmatprep.subr.mxu0 %v605_v4 }
  0x8f   :  { %546 = vmatpush3.msra.mxu1 %v670_v10  ;;  %523 = vmatpush3.msra.mxu0 %v697_v13 }
  0x90   :  { %547 = vmatprep.subr.mxu1 %v605_v4  ;;  %524 = vmatprep.subr.mxu0 %v605_v4 }
  0x91   :  { %548 = vmatpush3.msra.mxu1 %v679_v11  ;;  %525 = vmatpush3.msra.mxu0 %v706_v14 }
  0x92   :  { %549 = vmatprep.subr.mxu1 %v605_v4  ;;  %526 = vmatprep.subr.mxu0 %v605_v4 }
  0x93   :  { %550 = vmatpush3.msra.mxu1 %v688_v12  ;;  %527 = vmatpush3.msra.mxu0 %v715_v15 }
  0x94   :  { %551 = vmatprep.subr.mxu1 %v605_v4  ;;  %528 = vmatprep.subr.mxu0 %v605_v4 }
  0x95   :  { %552 = vmatpush3.msra.mxu1 %v697_v13  ;;  %529 = vmatpush3.msra.mxu0 %v724_v16 }
  0x96   :  { %553 = vmatprep.subr.mxu1 %v605_v4  ;;  %530 = vmatprep.subr.mxu0 %v605_v4 }
  0x97   :  { %554 = vmatpush3.msra.mxu1 %v706_v14  ;;  %531 = vmatpush3.msra.mxu0 %v733_v17 }
  0x98   :  { %555 = vmatprep.subr.mxu1 %v605_v4  ;;  %532 = vmatprep.subr.mxu0 %v605_v4 }
  0x99   :  { %556 = vmatpush3.msra.mxu1 %v715_v15  ;;  %533 = vmatpush3.msra.mxu0 %v743_v18 }
  0x9a   :  { %557 = vmatprep.subr.mxu1 %v605_v4  ;;  %535 = vmatmul.mubr.msk.f32.vlgmr.msra.gmra.mxu0 %vm34_vm2, %v388_v27 }
  0x9b   :  { %558 = vmatpush3.msra.mxu1 %v724_v16  ;;  %563 = vmatprep.mubr.msk.f32.mxu1 %vm608_vm1, %v605_v4 }
  0x9c   :  { %559 = vmatprep.subr.mxu1 %v605_v4 }
  0x9d   :  { %560 = vmatpush3.msra.mxu1 %v733_v17 }
  0x9e   :  { %561 = vmatprep.subr.mxu1 %v605_v4 }
  0x9f   :  { %562 = vmatpush3.msra.mxu1 %v743_v18 }
  0xa0   :  { %564 = vmatmul.mubr.msk.f32.vlgmr.msra.gmra.mxu1 %vm34_vm2, %v391_v28 }
 0x140   :  { %v108_v29 = vpop.f32.mrf.mxu0 }
 0x142   :  { %v478_v30 = vpop.f32.mrf.mxu0 }
 0x146   :  { %v187_v31 = vpop.f32.mrf.mxu1 }
 0x147   :  { %350 = vrot.lane.b32.xlu1 %v187_v31, %s609_s1 }
 0x148   :  { %v507_v32 = vpop.f32.mrf.mxu1 }
 0x15a   :  { %v266_v33 = vpop.f32.mrf.mxu0 }
 0x15b   :  { %354 = vrot.lane.b32.xlu0 %v266_v33, %s610_s8 }
 0x15c   :  { %v536_v34 = vpop.f32.mrf.mxu0 }
 0x160   :  { %v345_v35 = vpop.f32.mrf.mxu1 }
 0x161   :  { %358 = vrot.lane.b32.xlu1 %v345_v35, %s611_s9 }
 0x162   :  { %v565_v36 = vpop.f32.mrf.mxu1 }
 0x1b9   :  { %v351_v37 = vpop.permute.xlu1 %350 }
 0x1ba   :  { %v362_v39 = vsel %vm361_vm7, %v108_v29, %v351_v37 }
 0x1cd   :  { %v355_v38 = vpop.permute.xlu0 %354 }
 0x1ce   :  { %v364_v40 = vsel %vm363_vm8, %v362_v39, %v355_v38 }
 0x1d3   :  { %v359_v41 = vpop.permute.xlu1 %358 }
 0x1d4   :  { %v366_v42 = vsel %vm365_vm9, %v364_v40, %v359_v41 }
 0x1d5   :  { %367 = vst [vmem:[#allocation2] sm:$0xff] %v366_v42 }
 0x1d6   :  { %592 = shalt.err (!%p589_p4)
}
 0x1d7   :  { %377 = dma.vmem_to_hbm [thread:$0]  %s375_s11, 128, %s833_s2, [#allocation3]  }
 0x1d8   :  { %601 = dma.done.wait [#allocation3], 128  }
 0x1d9   :  { %602 = vsyncadd [#allocation3], 4294967168 }
 0x1da   :  { %381 = vsyncpa [#allocation3], 1 }

// kernel: tpu_custom_call.1
= control target key start
LH: loop header
LB: loop body
LE: loop exit
PB: predicated region body
PF: predicated region fallthrough
CT: control target
= control target key end

     0   :  { %v603_v1 = vmov 0   ;;  %v604_v2 = vmov 2   ;;  %vm38_vm0 = vcmask 1043456   ;;  %v605_v4 = vmov 0.0   ;;  %s831_s0 = inlined_call_operand.vmem [shape: s32[8,4], index: 0, kind: input, shape index: {}]   ;;  %s832_s1 = inlined_call_operand.vmem [shape: f32[100,32], index: 1, kind: input, shape index: {}]   ;;  %s833_s2 = inlined_call_operand.hbm [shape: f32[8,128], index: 2, kind: output, shape index: {}]  }
   0x1   :  { %v12_v0 = vld [vmem:[%s831_s0] sm:$0xff]  ;;  %576 = vset.pattern.permute.xlu0 %v603_v1  ;;  %578 = vset.pattern.permute.xlu1 %v604_v2  ;;  %v646_v5 = vld [vmem:[%s832_s1 + $0x58] sm:$0xff] }
   0x2   :  { %v634_v3 = vld [vmem:[%s832_s1 + $0x60] sm:$0xf]  ;;  %29 = vperm.xlu0 %576, %v12_v0   ;;  %192 = vperm.xlu1 %578, %v12_v0  }
   0x3   :  { %450 = vmatprep.subr.mxu0 %v605_v4  ;;  %479 = vmatprep.subr.mxu1 %v605_v4 }
   0x4   :  { %451 = vmatpush3.msk.msra.mxu0 %vm38_vm0, %v634_v3  ;;  %480 = vmatpush3.msk.msra.mxu1 %vm38_vm0, %v634_v3 }
   0x5   :  { %452 = vmatprep.subr.mxu0 %v605_v4  ;;  %481 = vmatprep.subr.mxu1 %v605_v4 }
   0x6   :  { %7 = vsyncpa [#allocation3], 0  ;;  %v606_v6 = vmov 1   ;;  %v607_v7 = vmov 3   ;;  %v653_v8 = vld [vmem:[%s832_s1 + $0x50] sm:$0xff]  ;;  %453 = vmatpush3.msra.mxu0 %v646_v5  ;;  %482 = vmatpush3.msra.mxu1 %v646_v5  ;;  %v661_v9 = vld [vmem:[%s832_s1 + $0x48] sm:$0xff]  ;;  %v13_v19 = vlaneseq }
   0x7   :  { %577 = vset.pattern.permute.xlu0 %v606_v6  ;;  %579 = vset.pattern.permute.xlu1 %v607_v7  ;;  %v670_v10 = vld [vmem:[%s832_s1 + $0x40] sm:$0xff]  ;;  %v679_v11 = vld [vmem:[%s832_s1 + $0x38] sm:$0xff]  ;;  %v688_v12 = vld [vmem:[%s832_s1 + $0x30] sm:$0xff]  ;;  %vm608_vm1 = vmmov 0   ;;  %vm34_vm2 = vcmask 818176   ;;  %s610_s8 = smov 64  }
   0x8   :  { %113 = vperm.xlu0 %577, %v12_v0   ;;  %271 = vperm.xlu1 %579, %v12_v0   ;;  %v697_v13 = vld [vmem:[%s832_s1 + $0x28] sm:$0xff]  ;;  %v706_v14 = vld [vmem:[%s832_s1 + $0x20] sm:$0xff]  ;;  %v715_v15 = vld [vmem:[%s832_s1 + $0x18] sm:$0xff]  ;;  %v758_v20 = vand.u32 127, %v13_v19  ;;  %s611_s9 = smov 96   ;;  %vm361_vm7 = vcmask 261120  }
   0x9   :  { %454 = vmatprep.subr.mxu0 %v605_v4  ;;  %483 = vmatprep.subr.mxu1 %v605_v4  ;;  %v724_v16 = vld [vmem:[%s832_s1 + $0x10] sm:$0xff]  ;;  %v733_v17 = vld [vmem:[%s832_s1 + $0x8] sm:$0xff]  ;;  %v743_v18 = vld [vmem:[%s832_s1] sm:$0xff]  ;;  %s609_s1 = smov 32   ;;  %vm363_vm8 = vcmask 523264   ;;  %s612_s10 = smov [#allocation2]  }
   0xa   :  { %455 = vmatpush3.msra.mxu0 %v653_v8  ;;  %484 = vmatpush3.msra.mxu1 %v653_v8  ;;  %s374_s11 = sshll.u32 %s612_s10, 4  ;;  %vm365_vm9 = vcmask 785408   ;;  %s375_s11 = int_to_ptr.vmem [resolvable:$true] %s374_s11 }
   0xb   :  { %456 = vmatprep.subr.mxu0 %v605_v4  ;;  %485 = vmatprep.subr.mxu1 %v605_v4  ;;  %s581_s12 = scalar_lea.vmem %s375_s11, 128  ;;  %p586_p1 = scmp.lt.s32.totalorder %s375_s11, %s375_s11 }
   0xc   :  { %457 = vmatpush3.msra.mxu0 %v661_v9  ;;  %486 = vmatpush3.msra.mxu1 %v661_v9  ;;  %p582_p0 = scmp.ne.s32.totalorder %s375_s11, %s581_s12  ;;  %p587_p2 = scmp.lt.s32.totalorder %s581_s12, %s581_s12 }
   0xd   :  { %458 = vmatprep.subr.mxu0 %v605_v4  ;;  %487 = vmatprep.subr.mxu1 %v605_v4 }
   0xe   :  { %459 = vmatpush3.msra.mxu0 %v670_v10  ;;  %488 = vmatpush3.msra.mxu1 %v670_v10  ;;  %p588_p3 = por %p587_p2, %p586_p1 }
   0xf   :  { %460 = vmatprep.subr.mxu0 %v605_v4  ;;  %489 = vmatprep.subr.mxu1 %v605_v4 }
  0x10   :  { %461 = vmatpush3.msra.mxu0 %v679_v11  ;;  %490 = vmatpush3.msra.mxu1 %v679_v11  ;;  %p589_p4 = pnand %p588_p3, %p582_p0 }
  0x11   :  { %462 = vmatprep.subr.mxu0 %v605_v4  ;;  %491 = vmatprep.subr.mxu1 %v605_v4 }
  0x12   :  { %463 = vmatpush3.msra.mxu0 %v688_v12  ;;  %492 = vmatpush3.msra.mxu1 %v688_v12 }
  0x13   :  { %464 = vmatprep.subr.mxu0 %v605_v4  ;;  %493 = vmatprep.subr.mxu1 %v605_v4 }
  0x14   :  { %465 = vmatpush3.msra.mxu0 %v697_v13  ;;  %494 = vmatpush3.msra.mxu1 %v697_v13 }
  0x15   :  { %466 = vmatprep.subr.mxu0 %v605_v4  ;;  %495 = vmatprep.subr.mxu1 %v605_v4 }
  0x16   :  { %467 = vmatpush3.msra.mxu0 %v706_v14  ;;  %496 = vmatpush3.msra.mxu1 %v706_v14 }
  0x17   :  { %468 = vmatprep.subr.mxu0 %v605_v4  ;;  %497 = vmatprep.subr.mxu1 %v605_v4 }
  0x18   :  { %469 = vmatpush3.msra.mxu0 %v715_v15  ;;  %498 = vmatpush3.msra.mxu1 %v715_v15 }
  0x19   :  { %470 = vmatprep.subr.mxu0 %v605_v4  ;;  %499 = vmatprep.subr.mxu1 %v605_v4 }
  0x1a   :  { %471 = vmatpush3.msra.mxu0 %v724_v16  ;;  %476 = vmatprep.mubr.msk.f32.mxu0 %vm608_vm1, %v605_v4 }
  0x1b   :  { %472 = vmatprep.subr.mxu0 %v605_v4  ;;  %500 = vmatpush3.msra.mxu1 %v724_v16 }
  0x1c   :  { %473 = vmatpush3.msra.mxu0 %v733_v17  ;;  %501 = vmatprep.subr.mxu1 %v605_v4 }
  0x1d   :  { %474 = vmatprep.subr.mxu0 %v605_v4  ;;  %502 = vmatpush3.msra.mxu1 %v733_v17 }
  0x1e   :  { %475 = vmatpush3.msra.mxu0 %v743_v18  ;;  %503 = vmatprep.subr.mxu1 %v605_v4 }
  0x1f   :  { %508 = vmatprep.subr.mxu0 %v605_v4  ;;  %504 = vmatpush3.msra.mxu1 %v743_v18 }
  0x20   :  { %505 = vmatprep.mubr.msk.f32.mxu1 %vm608_vm1, %v605_v4  ;;  %537 = vmatprep.subr.mxu1 %v605_v4 }
  0x21   :  { %580 = vset.pattern.permute.xlu0 %v607_v7 }
  0x7d   :  { %v30_v21 = vpop.permute.xlu0 %29  ;;  %v193_v25 = vpop.permute.xlu1 %192 }
  0x7e   :  { %vm31_vm3 = vcmp.eq.s32.totalorder %v758_v20, %v30_v21  ;;  %vm194_vm5 = vcmp.eq.s32.totalorder %v758_v20, %v193_v25 }
  0x7f   :  { %v382_v22 = vsel %vm31_vm3, 1.0, %v605_v4  ;;  %v388_v27 = vsel %vm194_vm5, 1.0, %v605_v4 }
  0x80   :  { %477 = vmatmul.mubr.msk.f32.vlgmr.msra.gmra.mxu0 %vm34_vm2, %v382_v22 }
  0x81   :  { %509 = vmatpush3.msk.msra.mxu0 %vm38_vm0, %v634_v3  ;;  %534 = vmatprep.mubr.msk.f32.mxu0 %vm608_vm1, %v605_v4 }
  0x82   :  { %510 = vmatprep.subr.mxu0 %v605_v4 }
  0x83   :  { %v114_v23 = vpop.permute.xlu0 %113  ;;  %511 = vmatpush3.msra.mxu0 %v646_v5  ;;  %v272_v26 = vpop.permute.xlu1 %271 }
  0x84   :  { %vm115_vm4 = vcmp.eq.s32.totalorder %v758_v20, %v114_v23  ;;  %512 = vmatprep.subr.mxu0 %v605_v4  ;;  %vm273_vm6 = vcmp.eq.s32.totalorder %v758_v20, %v272_v26 }
  0x85   :  { %v385_v24 = vsel %vm115_vm4, 1.0, %v605_v4  ;;  %513 = vmatpush3.msra.mxu0 %v653_v8  ;;  %v391_v28 = vsel %vm273_vm6, 1.0, %v605_v4 }
  0x86   :  { %506 = vmatmul.mubr.msk.f32.vlgmr.msra.gmra.mxu1 %vm34_vm2, %v385_v24  ;;  %514 = vmatprep.subr.mxu0 %v605_v4 }
  0x87   :  { %538 = vmatpush3.msk.msra.mxu1 %vm38_vm0, %v634_v3  ;;  %515 = vmatpush3.msra.mxu0 %v661_v9 }
  0x88   :  { %539 = vmatprep.subr.mxu1 %v605_v4  ;;  %516 = vmatprep.subr.mxu0 %v605_v4 }
  0x89   :  { %540 = vmatpush3.msra.mxu1 %v646_v5  ;;  %517 = vmatpush3.msra.mxu0 %v670_v10 }
  0x8a   :  { %541 = vmatprep.subr.mxu1 %v605_v4  ;;  %518 = vmatprep.subr.mxu0 %v605_v4 }
  0x8b   :  { %542 = vmatpush3.msra.mxu1 %v653_v8  ;;  %519 = vmatpush3.msra.mxu0 %v679_v11 }
  0x8c   :  { %543 = vmatprep.subr.mxu1 %v605_v4  ;;  %520 = vmatprep.subr.mxu0 %v605_v4 }
  0x8d   :  { %544 = vmatpush3.msra.mxu1 %v661_v9  ;;  %521 = vmatpush3.msra.mxu0 %v688_v12 }
  0x8e   :  { %545 = vmatprep.subr.mxu1 %v605_v4  ;;  %522 = vmatprep.subr.mxu0 %v605_v4 }
  0x8f   :  { %546 = vmatpush3.msra.mxu1 %v670_v10  ;;  %523 = vmatpush3.msra.mxu0 %v697_v13 }
  0x90   :  { %547 = vmatprep.subr.mxu1 %v605_v4  ;;  %524 = vmatprep.subr.mxu0 %v605_v4 }
  0x91   :  { %548 = vmatpush3.msra.mxu1 %v679_v11  ;;  %525 = vmatpush3.msra.mxu0 %v706_v14 }
  0x92   :  { %549 = vmatprep.subr.mxu1 %v605_v4  ;;  %526 = vmatprep.subr.mxu0 %v605_v4 }
  0x93   :  { %550 = vmatpush3.msra.mxu1 %v688_v12  ;;  %527 = vmatpush3.msra.mxu0 %v715_v15 }
  0x94   :  { %551 = vmatprep.subr.mxu1 %v605_v4  ;;  %528 = vmatprep.subr.mxu0 %v605_v4 }
  0x95   :  { %552 = vmatpush3.msra.mxu1 %v697_v13  ;;  %529 = vmatpush3.msra.mxu0 %v724_v16 }
  0x96   :  { %553 = vmatprep.subr.mxu1 %v605_v4  ;;  %530 = vmatprep.subr.mxu0 %v605_v4 }
  0x97   :  { %554 = vmatpush3.msra.mxu1 %v706_v14  ;;  %531 = vmatpush3.msra.mxu0 %v733_v17 }
  0x98   :  { %555 = vmatprep.subr.mxu1 %v605_v4  ;;  %532 = vmatprep.subr.mxu0 %v605_v4 }
  0x99   :  { %556 = vmatpush3.msra.mxu1 %v715_v15  ;;  %533 = vmatpush3.msra.mxu0 %v743_v18 }
  0x9a   :  { %557 = vmatprep.subr.mxu1 %v605_v4  ;;  %535 = vmatmul.mubr.msk.f32.vlgmr.msra.gmra.mxu0 %vm34_vm2, %v388_v27 }
  0x9b   :  { %558 = vmatpush3.msra.mxu1 %v724_v16  ;;  %563 = vmatprep.mubr.msk.f32.mxu1 %vm608_vm1, %v605_v4 }
  0x9c   :  { %559 = vmatprep.subr.mxu1 %v605_v4 }
  0x9d   :  { %560 = vmatpush3.msra.mxu1 %v733_v17 }
  0x9e   :  { %561 = vmatprep.subr.mxu1 %v605_v4 }
  0x9f   :  { %562 = vmatpush3.msra.mxu1 %v743_v18 }
  0xa0   :  { %564 = vmatmul.mubr.msk.f32.vlgmr.msra.gmra.mxu1 %vm34_vm2, %v391_v28 }
 0x140   :  { %v108_v29 = vpop.f32.mrf.mxu0 }
 0x142   :  { %v478_v30 = vpop.f32.mrf.mxu0 }
 0x146   :  { %v187_v31 = vpop.f32.mrf.mxu1 }
 0x147   :  { %350 = vrot.lane.b32.xlu1 %v187_v31, %s609_s1 }
 0x148   :  { %v507_v32 = vpop.f32.mrf.mxu1 }
 0x15a   :  { %v266_v33 = vpop.f32.mrf.mxu0 }
 0x15b   :  { %354 = vrot.lane.b32.xlu0 %v266_v33, %s610_s8 }
 0x15c   :  { %v536_v34 = vpop.f32.mrf.mxu0 }
 0x160   :  { %v345_v35 = vpop.f32.mrf.mxu1 }
 0x161   :  { %358 = vrot.lane.b32.xlu1 %v345_v35, %s611_s9 }
 0x162   :  { %v565_v36 = vpop.f32.mrf.mxu1 }
 0x1b9   :  { %v351_v37 = vpop.permute.xlu1 %350 }
 0x1ba   :  { %v362_v39 = vsel %vm361_vm7, %v108_v29, %v351_v37 }
 0x1cd   :  { %v355_v38 = vpop.permute.xlu0 %354 }
 0x1ce   :  { %v364_v40 = vsel %vm363_vm8, %v362_v39, %v355_v38 }
 0x1d3   :  { %v359_v41 = vpop.permute.xlu1 %358 }
 0x1d4   :  { %v366_v42 = vsel %vm365_vm9, %v364_v40, %v359_v41 }
 0x1d5   :  { %367 = vst [vmem:[#allocation2] sm:$0xff] %v366_v42 }
 0x1d6   :  { %592 = shalt.err (!%p589_p4)
}
 0x1d7   :  { %377 = dma.vmem_to_hbm [thread:$0]  %s375_s11, 128, %s833_s2, [#allocation3]  }
 0x1d8   :  { %601 = dma.done.wait [#allocation3], 128  }
 0x1d9   :  { %602 = vsyncadd [#allocation3], 4294967168 }
 0x1da   :  { %381 = vsyncpa [#allocation3], 1 }

</bundles_post_ra>
